<compile_context>
chip_gen: v5e
topology: v5e:2x2
jax: 0.10.0
libtpu: 0.0.40
codegen_flags: <defaults>
</compile_context>

<pallas_src>
import functools

import jax
import jax.numpy as jnp
from jax.experimental import pallas as pl
from jax.experimental.pallas import tpu as pltpu

HIDDEN = 128


def _round_up(n, m):
    return ((n + m - 1) // m) * m


def _actor_critic_kernel(x_ref, w1_ref, b1_ref, w2_ref, b2_ref,
                         wh_ref, bh_ref, out_ref, *, num_actions):
    # fc1 + relu  (bf16 MXU matmul, f32 accumulate + f32 epilogue)
    h1 = jnp.dot(x_ref[...], w1_ref[...], preferred_element_type=jnp.float32)
    h1 = jnp.maximum(h1 + b1_ref[...], 0.0)

    # fc2 + relu
    h2 = jnp.dot(h1.astype(w2_ref.dtype), w2_ref[...],
                 preferred_element_type=jnp.float32)
    h2 = jnp.maximum(h2 + b2_ref[...], 0.0)

    # fused actor+critic head: one MXU pass, lane-dense 128-wide result.
    # lanes [0, A) = actor logits, lane A = critic value, rest = padding.
    heads = jnp.dot(h2.astype(wh_ref.dtype), wh_ref[...],
                    preferred_element_type=jnp.float32)
    heads = heads + bh_ref[...]

    lane = jax.lax.broadcasted_iota(jnp.int32, heads.shape, dimension=1)
    is_logit = lane < num_actions

    # stable softmax over the real A logits only (padded lanes masked to -inf)
    logits = jnp.where(is_logit, heads, -jnp.inf)
    m = jnp.max(logits, axis=-1, keepdims=True)
    e = jnp.where(is_logit, jnp.exp(logits - m), 0.0)
    denom = jnp.sum(e, axis=-1, keepdims=True)
    policy = e * pl.reciprocal(denom, approx=True)

    # single lane-dense store: [ policy_0 .. policy_{A-1} | value | zeros ]
    out = jnp.where(is_logit, policy,
                    jnp.where(lane == num_actions, heads, 0.0))
    out_ref[...] = out.astype(out_ref.dtype)


def actor_critic_forward(x, params, *, tile_b=128, use_bf16=True):
    """x: [B, input_dim] f32. Returns (policy [B, A] f32, value [B, 1] f32)."""
    w1, b1, w2, b2, wa, ba, wc, bc = params
    B, input_dim = x.shape
    H = w1.shape[1]
    A = wa.shape[1]

    # ---- host-side layout prep -------------------------------------------
    kp = _round_up(max(input_dim, 128), 128)      # lane-aligned fc1 K
    bp = _round_up(max(B, 8), tile_b)             # padded / tiled batch
    hw = _round_up(A + 1, 128)                    # fused head lane width

    x_p = jnp.pad(x, ((0, bp - B), (0, kp - input_dim)))
    w1_p = jnp.pad(w1, ((0, kp - input_dim), (0, 0)))
    wh = jnp.pad(jnp.concatenate([wa, wc], axis=1),
                 ((0, 0), (0, hw - (A + 1))))
    bh = jnp.pad(jnp.concatenate([ba, bc], axis=0), (0, hw - (A + 1)))

    compute_dtype = jnp.bfloat16 if use_bf16 else jnp.float32
    x_p = x_p.astype(compute_dtype)
    w1_p = w1_p.astype(compute_dtype)
    w2_c = w2.astype(compute_dtype)
    wh = wh.astype(compute_dtype)

    # biases as [1, N] f32 rows so they broadcast cleanly in the f32 epilogue
    b1_r = b1.reshape(1, H).astype(jnp.float32)
    b2_r = b2.reshape(1, H).astype(jnp.float32)
    bh_r = bh.reshape(1, hw).astype(jnp.float32)

    n_blocks = bp // tile_b
    resident = lambda shape: pl.BlockSpec(shape, lambda i: (0, 0))

    itemsize = jnp.dtype(compute_dtype).itemsize
    cost = pl.CostEstimate(
        flops=2 * bp * (kp * H + H * H + H * hw),
        transcendentals=bp * (A + 1),
        bytes_accessed=(x_p.size + w1_p.size + w2_c.size + wh.size) * itemsize
        + (b1_r.size + b2_r.size + bh_r.size) * 4
        + bp * hw * 4,
    )

    out = pl.pallas_call(
        functools.partial(_actor_critic_kernel, num_actions=A),
        out_shape=jax.ShapeDtypeStruct((bp, hw), jnp.float32),
        grid=(n_blocks,),
        in_specs=[
            pl.BlockSpec((tile_b, kp), lambda i: (i, 0)),   # x tile (pipelined)
            resident((kp, H)), resident((1, H)),            # fc1
            resident((H, H)), resident((1, H)),             # fc2
            resident((H, hw)), resident((1, hw)),           # fused heads
        ],
        out_specs=pl.BlockSpec((tile_b, hw), lambda i: (i, 0)),
        compiler_params=pltpu.CompilerParams(
            dimension_semantics=("parallel",)),
        cost_estimate=cost,
    )(x_p, w1_p, b1_r, w2_c, b2_r, wh, bh_r)

    policy = out[:B, :A]
    value = out[:B, A:A + 1]
    return policy, value


def init_params(key, input_dim, output_dim, hidden=HIDDEN):
    """Deterministic init mimicking nn.Linear's U(-1/sqrt(fan_in), 1/sqrt(fan_in)).
    Weights stored as (in, out), i.e. pre-transposed for `x @ W`."""
    def linear(k, fan_in, fan_out):
        kw, kb = jax.random.split(k)
        bound = 1.0 / jnp.sqrt(fan_in)
        w = jax.random.uniform(kw, (fan_in, fan_out), jnp.float32, -bound, bound)
        b = jax.random.uniform(kb, (fan_out,), jnp.float32, -bound, bound)
        return w, b

    k1, k2, k3, k4 = jax.random.split(key, 4)
    w1, b1 = linear(k1, input_dim, hidden)
    w2, b2 = linear(k2, hidden, hidden)
    wa, ba = linear(k3, hidden, output_dim)
    wc, bc = linear(k4, hidden, 1)
    return (w1, b1, w2, b2, wa, ba, wc, bc)


def _reference_forward(x, params, use_bf16=True):
    """Pure-JAX reference mirroring the kernel's precision scheme
    (bf16 matmul inputs, f32 accumulation/epilogue)."""
    w1, b1, w2, b2, wa, ba, wc, bc = params
    cdt = jnp.bfloat16 if use_bf16 else jnp.float32
    f32 = jnp.float32
    h1 = jax.nn.relu(
        jnp.dot(x.astype(cdt), w1.astype(cdt), preferred_element_type=f32) + b1)
    h2 = jax.nn.relu(
        jnp.dot(h1.astype(cdt), w2.astype(cdt), preferred_element_type=f32) + b2)
    logits = jnp.dot(h2.astype(cdt), wa.astype(cdt),
                     preferred_element_type=f32) + ba
    policy = jax.nn.softmax(logits, axis=-1)
    value = jnp.dot(h2.astype(cdt), wc.astype(cdt),
                    preferred_element_type=f32) + bc
    return policy, value


if __name__ == "__main__":
    key = jax.random.PRNGKey(0)
    kx, kp = jax.random.split(key)

    batch, input_dim, output_dim = 4, 16, 6
    x = jax.random.normal(kx, (batch, input_dim), jnp.float32)
    params = init_params(kp, input_dim, output_dim)

    policy, value = actor_critic_forward(x, params)
    jax.block_until_ready((policy, value))

    # sanity check against a precision-matched pure-JAX reference
    policy_ref, value_ref = _reference_forward(x, params)
    assert policy.shape == (batch, output_dim) and value.shape == (batch, 1)
    # approx reciprocal + bf16 matmul path -> slightly loosened tolerances
    assert jnp.allclose(policy, policy_ref, atol=2e-3), "policy mismatch"
    assert jnp.allclose(value, value_ref, atol=2e-3, rtol=1e-2), "value mismatch"
    assert jnp.allclose(jnp.sum(policy, axis=-1), 1.0, atol=2e-3), "policy not normalized"

    print("KERNEL_OK")
</pallas_src>

<mosaic_0001>
module attributes {stable_mosaic.version = 11 : i64} {
  func.func @_actor_critic_kernel(%arg0: i32, %arg1: memref<128x128xbf16, #tpu.memory_space<vmem>>, %arg2: memref<128x128xbf16, #tpu.memory_space<vmem>>, %arg3: memref<1x128xf32, #tpu.memory_space<vmem>>, %arg4: memref<128x128xbf16, #tpu.memory_space<vmem>>, %arg5: memref<1x128xf32, #tpu.memory_space<vmem>>, %arg6: memref<128x128xbf16, #tpu.memory_space<vmem>>, %arg7: memref<1x128xf32, #tpu.memory_space<vmem>>, %arg8: memref<128x128xf32, #tpu.memory_space<vmem>>) attributes {dimension_semantics = [#tpu.dimension_semantics<parallel>], iteration_bounds = array<i64: 1>, scalar_prefetch = 0 : i64, scratch_operands = 0 : i64, tpu.core_type = #tpu.core_type<tc>, window_params = [{transform_indices = @transform_0, window_bounds = array<i64: 128, 128>}, {pipeline_mode = #tpu.pipeline_mode<synchronous>, transform_indices = @transform_1, window_bounds = array<i64: 128, 128>}, {pipeline_mode = #tpu.pipeline_mode<synchronous>, transform_indices = @transform_2, window_bounds = array<i64: 1, 128>}, {pipeline_mode = #tpu.pipeline_mode<synchronous>, transform_indices = @transform_3, window_bounds = array<i64: 128, 128>}, {pipeline_mode = #tpu.pipeline_mode<synchronous>, transform_indices = @transform_4, window_bounds = array<i64: 1, 128>}, {pipeline_mode = #tpu.pipeline_mode<synchronous>, transform_indices = @transform_5, window_bounds = array<i64: 128, 128>}, {pipeline_mode = #tpu.pipeline_mode<synchronous>, transform_indices = @transform_6, window_bounds = array<i64: 1, 128>}, {transform_indices = @transform_7, window_bounds = array<i64: 128, 128>}]} {
    %c0 = arith.constant 0 : index
    %c0_0 = arith.constant 0 : index
    %0 = vector.load %arg1[%c0, %c0_0] : memref<128x128xbf16, #tpu.memory_space<vmem>>, vector<128x128xbf16>
    %c0_1 = arith.constant 0 : index
    %c0_2 = arith.constant 0 : index
    %1 = vector.load %arg2[%c0_1, %c0_2] : memref<128x128xbf16, #tpu.memory_space<vmem>>, vector<128x128xbf16>
    %cst = arith.constant dense<0.000000e+00> : vector<128x128xf32>
    %2 = tpu.matmul %0, %1, %cst {dimension_numbers = #tpu.dot_dimension_numbers<[1], [0], [0], [1], [0, 0, 1, 1], [], []>} : vector<128x128xbf16>, vector<128x128xbf16>, vector<128x128xf32> -> vector<128x128xf32>
    %c0_3 = arith.constant 0 : index
    %c0_4 = arith.constant 0 : index
    %3 = vector.load %arg3[%c0_3, %c0_4] : memref<1x128xf32, #tpu.memory_space<vmem>>, vector<1x128xf32>
    %4 = vector.broadcast %3 : vector<1x128xf32> to vector<128x128xf32>
    %5 = arith.addf %2, %4 : vector<128x128xf32>
    %cst_5 = arith.constant 0.000000e+00 : f32
    %6 = vector.broadcast %cst_5 : f32 to vector<128x128xf32>
    %7 = arith.maximumf %5, %6 : vector<128x128xf32>
    %8 = arith.truncf %7 : vector<128x128xf32> to vector<128x128xbf16>
    %c0_6 = arith.constant 0 : index
    %c0_7 = arith.constant 0 : index
    %9 = vector.load %arg4[%c0_6, %c0_7] : memref<128x128xbf16, #tpu.memory_space<vmem>>, vector<128x128xbf16>
    %cst_8 = arith.constant dense<0.000000e+00> : vector<128x128xf32>
    %10 = tpu.matmul %8, %9, %cst_8 {dimension_numbers = #tpu.dot_dimension_numbers<[1], [0], [0], [1], [0, 0, 1, 1], [], []>} : vector<128x128xbf16>, vector<128x128xbf16>, vector<128x128xf32> -> vector<128x128xf32>
    %c0_9 = arith.constant 0 : index
    %c0_10 = arith.constant 0 : index
    %11 = vector.load %arg5[%c0_9, %c0_10] : memref<1x128xf32, #tpu.memory_space<vmem>>, vector<1x128xf32>
    %12 = vector.broadcast %11 : vector<1x128xf32> to vector<128x128xf32>
    %13 = arith.addf %10, %12 : vector<128x128xf32>
    %cst_11 = arith.constant 0.000000e+00 : f32
    %14 = vector.broadcast %cst_11 : f32 to vector<128x128xf32>
    %15 = arith.maximumf %13, %14 : vector<128x128xf32>
    %16 = arith.truncf %15 : vector<128x128xf32> to vector<128x128xbf16>
    %c0_12 = arith.constant 0 : index
    %c0_13 = arith.constant 0 : index
    %17 = vector.load %arg6[%c0_12, %c0_13] : memref<128x128xbf16, #tpu.memory_space<vmem>>, vector<128x128xbf16>
    %cst_14 = arith.constant dense<0.000000e+00> : vector<128x128xf32>
    %18 = tpu.matmul %16, %17, %cst_14 {dimension_numbers = #tpu.dot_dimension_numbers<[1], [0], [0], [1], [0, 0, 1, 1], [], []>} : vector<128x128xbf16>, vector<128x128xbf16>, vector<128x128xf32> -> vector<128x128xf32>
    %c0_15 = arith.constant 0 : index
    %c0_16 = arith.constant 0 : index
    %19 = vector.load %arg7[%c0_15, %c0_16] : memref<1x128xf32, #tpu.memory_space<vmem>>, vector<1x128xf32>
    %20 = vector.broadcast %19 : vector<1x128xf32> to vector<128x128xf32>
    %21 = arith.addf %18, %20 : vector<128x128xf32>
    %22 = tpu.iota {dimensions = array<i32: 1>} : vector<128x128xi32>
    %c6_i32 = arith.constant 6 : i32
    %23 = vector.broadcast %c6_i32 : i32 to vector<128x128xi32>
    %24 = arith.cmpi slt, %22, %23 : vector<128x128xi32>
    %cst_17 = arith.constant 0xFF800000 : f32
    %25 = vector.broadcast %cst_17 : f32 to vector<128x128xf32>
    %26 = arith.select %24, %21, %25 : vector<128x128xi1>, vector<128x128xf32>
    %cst_18 = arith.constant dense<0xFF800000> : vector<128xf32>
    %27 = vector.multi_reduction <maximumf>, %26, %cst_18 [1] : vector<128x128xf32> to vector<128xf32>
    %28 = vector.shape_cast %27 : vector<128xf32> to vector<128x1xf32>
    %29 = vector.broadcast %28 : vector<128x1xf32> to vector<128x128xf32>
    %30 = arith.subf %26, %29 : vector<128x128xf32>
    %31 = math.exp %30 : vector<128x128xf32>
    %cst_19 = arith.constant 0.000000e+00 : f32
    %32 = vector.broadcast %cst_19 : f32 to vector<128x128xf32>
    %33 = arith.select %24, %31, %32 : vector<128x128xi1>, vector<128x128xf32>
    %cst_20 = arith.constant dense<0.000000e+00> : vector<128xf32>
    %34 = vector.multi_reduction <add>, %33, %cst_20 [1] : vector<128x128xf32> to vector<128xf32>
    %35 = vector.shape_cast %34 : vector<128xf32> to vector<128x1xf32>
    %36 = tpu.reciprocal %35 {approx = true} : vector<128x1xf32> -> vector<128x1xf32>
    %37 = vector.broadcast %36 : vector<128x1xf32> to vector<128x128xf32>
    %38 = arith.mulf %33, %37 : vector<128x128xf32>
    %c6_i32_21 = arith.constant 6 : i32
    %39 = vector.broadcast %c6_i32_21 : i32 to vector<128x128xi32>
    %40 = arith.cmpi eq, %22, %39 : vector<128x128xi32>
    %cst_22 = arith.constant 0.000000e+00 : f32
    %41 = vector.broadcast %cst_22 : f32 to vector<128x128xf32>
    %42 = arith.select %40, %21, %41 : vector<128x128xi1>, vector<128x128xf32>
    %43 = arith.select %24, %38, %42 : vector<128x128xi1>, vector<128x128xf32>
    %c0_23 = arith.constant 0 : index
    %c0_24 = arith.constant 0 : index
    %44 = vector.load %arg8[%c0_23, %c0_24] : memref<128x128xf32, #tpu.memory_space<vmem>>, vector<128x128xf32>
    tpu.vector_store %arg8[%c0_23, %c0_24], %43 {strides = array<i32>} : memref<128x128xf32, #tpu.memory_space<vmem>>, vector<128x128xf32>,
    return
  }
  func.func @transform_0(%arg0: i32) -> (i32, i32) {
    %c0_i32 = arith.constant 0 : i32
    %c0_i32_0 = arith.constant 0 : i32
    return %arg0, %c0_i32 : i32, i32
  }
  func.func @transform_1(%arg0: i32) -> (i32, i32) {
    %c0_i32 = arith.constant 0 : i32
    %c0_i32_0 = arith.constant 0 : i32
    %c0_i32_1 = arith.constant 0 : i32
    return %c0_i32, %c0_i32_0 : i32, i32
  }
  func.func @transform_2(%arg0: i32) -> (i32, i32) {
    %c0_i32 = arith.constant 0 : i32
    %c0_i32_0 = arith.constant 0 : i32
    %c0_i32_1 = arith.constant 0 : i32
    return %c0_i32, %c0_i32_0 : i32, i32
  }
  func.func @transform_3(%arg0: i32) -> (i32, i32) {
    %c0_i32 = arith.constant 0 : i32
    %c0_i32_0 = arith.constant 0 : i32
    %c0_i32_1 = arith.constant 0 : i32
    return %c0_i32, %c0_i32_0 : i32, i32
  }
  func.func @transform_4(%arg0: i32) -> (i32, i32) {
    %c0_i32 = arith.constant 0 : i32
    %c0_i32_0 = arith.constant 0 : i32
    %c0_i32_1 = arith.constant 0 : i32
    return %c0_i32, %c0_i32_0 : i32, i32
  }
  func.func @transform_5(%arg0: i32) -> (i32, i32) {
    %c0_i32 = arith.constant 0 : i32
    %c0_i32_0 = arith.constant 0 : i32
    %c0_i32_1 = arith.constant 0 : i32
    return %c0_i32, %c0_i32_0 : i32, i32
  }
  func.func @transform_6(%arg0: i32) -> (i32, i32) {
    %c0_i32 = arith.constant 0 : i32
    %c0_i32_0 = arith.constant 0 : i32
    %c0_i32_1 = arith.constant 0 : i32
    return %c0_i32, %c0_i32_0 : i32, i32
  }
  func.func @transform_7(%arg0: i32) -> (i32, i32) {
    %c0_i32 = arith.constant 0 : i32
    %c0_i32_0 = arith.constant 0 : i32
    return %arg0, %c0_i32 : i32, i32
  }
}

</mosaic_0001>

<bundles_post_ra>
// kernel: tpu_custom_call.1
= control target key start
LH: loop header
LB: loop body
LE: loop exit
PB: predicated region body
PF: predicated region fallthrough
CT: control target
= control target key end

     0   :  { %12 = vsyncpa [#allocation3], 0  ;;  %s1623_s0 = inlined_call_operand.hbm [shape: bf16[128,128], index: 0, kind: input, shape index: {}]   ;;  %s1624_s1 = inlined_call_operand.hbm [shape: bf16[128,128], index: 1, kind: input, shape index: {}]   ;;  %s1625_s2 = inlined_call_operand.vmem [shape: f32[1,128], index: 2, kind: input, shape index: {}]   ;;  %s1626_s3 = inlined_call_operand.hbm [shape: bf16[128,128], index: 3, kind: input, shape index: {}]   ;;  %s1627_s4 = inlined_call_operand.vmem [shape: f32[1,128], index: 4, kind: input, shape index: {}]   ;;  %s1628_s5 = inlined_call_operand.hbm [shape: bf16[128,128], index: 5, kind: input, shape index: {}]   ;;  %s1629_s6 = inlined_call_operand.vmem [shape: f32[1,128], index: 6, kind: input, shape index: {}]   ;;  %s1630_s7 = inlined_call_operand.hbm [shape: f32[128,128], index: 7, kind: output, shape index: {}]  }
   0x1   :  { %13 = vsyncpa [#allocation6], 0 }
   0x2   :  { %14 = vsyncpa [#allocation9], 0 }
   0x3   :  { %15 = vsyncpa [#allocation4], 0  ;;  %s33_s26 = sshll.u32 %s1624_s1, 4  ;;  %s1190_s27 = smov [#allocation5]   ;;  %s34_s26 = int_to_ptr.hbm [resolvable:$true] %s33_s26 }
   0x4   :  { %s35_s28 = sshll.u32 %s1190_s27, 4  ;;  %s20_s8 = sshll.u32 %s1623_s0, 4  ;;  %s36_s28 = int_to_ptr.vmem [resolvable:$true] %s35_s28  ;;  %s21_s8 = int_to_ptr.hbm [resolvable:$true] %s20_s8 }
   0x5   :  { %s1191_s9 = smov 64   ;;  %s1192_s10 = smov 4  }
   0x6   :  { %41 = dma.hbm_to_vmem [thread:$0]  %s34_s26, 1024, %s36_s28, [#allocation6], %s1191_s9, %s1191_s9, %s1192_s10  }
   0x7   :  { %s1193_s11 = smov [#allocation2]   ;;  %s48_s15 = sshll.u32 %s1626_s3, 4  ;;  %s49_s15 = int_to_ptr.hbm [resolvable:$true] %s48_s15 }
   0x8   :  { %s22_s12 = sshll.u32 %s1193_s11, 4  ;;  %s63_s17 = sshll.u32 %s1628_s5, 4  ;;  %s23_s12 = int_to_ptr.vmem [resolvable:$true] %s22_s12  ;;  %s64_s17 = int_to_ptr.hbm [resolvable:$true] %s63_s17 }
   0x9   :  { %28 = dma.hbm_to_vmem [thread:$0]  %s21_s8, 1024, %s23_s12, [#allocation3], %s1191_s9, %s1191_s9, %s1192_s10  }
   0xa   :  { %s1194_s18 = smov [#allocation7]   ;;  %s1195_s0 = smov [#allocation8]  }
   0xb   :  { %s50_s19 = sshll.u32 %s1194_s18, 4  ;;  %s65_s20 = sshll.u32 %s1195_s0, 4  ;;  %s51_s19 = int_to_ptr.vmem [resolvable:$true] %s50_s19  ;;  %s66_s20 = int_to_ptr.vmem [resolvable:$true] %s65_s20 }
   0xc   :  { %56 = dma.hbm_to_vmem [thread:$0]  %s49_s15, 1024, %s51_s19, [#allocation6], %s1191_s9, %s1191_s9, %s1192_s10  }
   0xd   :  { %71 = dma.hbm_to_vmem [thread:$0]  %s64_s17, 1024, %s66_s20, [#allocation9], %s1191_s9, %s1191_s9, %s1192_s10  }
   0xe   :  { %1182 = dma.done.wait [#allocation3], 1024  }
   0xf   :  { %1183 = vsyncadd [#allocation3], 4294966272 }
  0x10   :  { %1184 = dma.done.wait [#allocation6], 2048  }
  0x11   :  { %1185 = vsyncadd [#allocation6], 4294965248 }
  0x12   :  { %1186 = dma.done.wait [#allocation9], 1024  }
  0x13   :  { %1187 = vsyncadd [#allocation9], 4294966272  ;;  %v945_v0 = vld [vmem:[#allocation5 + $0x38] sm:$0xff]  ;;  %v944_v1 = vld [vmem:[#allocation5 + $0x30] sm:$0xff]  ;;  %s787_s26 = sshll.u32 %s1630_s7, 4  ;;  %s1197_s27 = smov 128   ;;  %s788_s26 = int_to_ptr.hbm [resolvable:$true] %s787_s26 }
  0x14   :  { %222 = vmatpush.bf16.msra.mxu0 %v945_v0  ;;  %962 = vmatpush.bf16.msra.mxu3 %v945_v0  ;;  %v943_v2 = vld [vmem:[#allocation5 + $0x28] sm:$0xff]  ;;  %v942_v3 = vld [vmem:[#allocation5 + $0x20] sm:$0xff]  ;;  %v941_v4 = vld [vmem:[#allocation5 + $0x18] sm:$0xff]  ;;  %s1198_s28 = smov 8  }
  0x15   :  { %v940_v5 = vld [vmem:[#allocation5 + $0x10] sm:$0xff]  ;;  %v939_v6 = vld [vmem:[#allocation5 + $0x8] sm:$0xff]  ;;  %v938_v7 = vld [vmem:[#allocation5] sm:$0xff] }
  0x16   :  { %v930_v8 = vld [vmem:[#allocation2] sm:$0xff]  ;;  %v936_v9 = vld [vmem:[#allocation2 + $0x30] sm:$0xff]  ;;  %v931_v10 = vld [vmem:[#allocation2 + $0x8] sm:$0xff] }
  0x17   :  { %v937_v11 = vld [vmem:[#allocation2 + $0x38] sm:$0xff]  ;;  %v932_v12 = vld [vmem:[#allocation2 + $0x10] sm:$0xff]  ;;  %v951_v16 = vld [vmem:[#allocation7 + $0x28] sm:$0xff] }
  0x18   :  { %223 = vmatpush.bf16.msra.mxu0 %v944_v1  ;;  %963 = vmatpush.bf16.msra.mxu3 %v944_v1  ;;  %v933_v13 = vld [vmem:[#allocation2 + $0x18] sm:$0xff]  ;;  %v952_v15 = vld [vmem:[#allocation7 + $0x30] sm:$0xff]  ;;  %v950_v17 = vld [vmem:[#allocation7 + $0x20] sm:$0xff] }
  0x19   :  { %v953_v14 = vld [vmem:[#allocation7 + $0x38] sm:$0xff]  ;;  %v934_v18 = vld [vmem:[#allocation2 + $0x20] sm:$0xff]  ;;  %v935_v19 = vld [vmem:[#allocation2 + $0x28] sm:$0xff] }
  0x1a   :  { %363 = vmatpush.bf16.msra.mxu1 %v953_v14  ;;  %v949_v20 = vld [vmem:[#allocation7 + $0x18] sm:$0xff]  ;;  %v948_v21 = vld [vmem:[#allocation7 + $0x10] sm:$0xff]  ;;  %v947_v22 = vld [vmem:[#allocation7 + $0x8] sm:$0xff] }
  0x1b   :  { %v946_v23 = vld [vmem:[#allocation7] sm:$0xff] }
  0x1c   :  { %224 = vmatpush.bf16.msra.mxu0 %v943_v2  ;;  %964 = vmatpush.bf16.msra.mxu3 %v943_v2  ;;  %v1254_v25 = vld [vmem:[%s1625_s2] ss:$0 sm:$0xff] }
  0x1e   :  { %364 = vmatpush.bf16.msra.mxu1 %v952_v15 }
  0x20   :  { %225 = vmatpush.bf16.msra.mxu0 %v942_v3  ;;  %965 = vmatpush.bf16.msra.mxu3 %v942_v3  ;;  %v961_v3 = vld [vmem:[#allocation8 + $0x38] sm:$0xff] }
  0x21   :  { %504 = vmatpush.bf16.msra.mxu2 %v961_v3 }
  0x22   :  { %365 = vmatpush.bf16.msra.mxu1 %v951_v16 }
  0x24   :  { %226 = vmatpush.bf16.msra.mxu0 %v941_v4  ;;  %966 = vmatpush.bf16.msra.mxu3 %v941_v4 }
  0x26   :  { %366 = vmatpush.bf16.msra.mxu1 %v950_v17 }
  0x28   :  { %227 = vmatpush.bf16.msra.mxu0 %v940_v5  ;;  %967 = vmatpush.bf16.msra.mxu3 %v940_v5  ;;  %v960_v5 = vld [vmem:[#allocation8 + $0x30] sm:$0xff] }
  0x29   :  { %505 = vmatpush.bf16.msra.mxu2 %v960_v5 }
  0x2a   :  { %367 = vmatpush.bf16.msra.mxu1 %v949_v20 }
  0x2c   :  { %228 = vmatpush.bf16.msra.mxu0 %v939_v6  ;;  %968 = vmatpush.bf16.msra.mxu3 %v939_v6  ;;  %v959_v6 = vld [vmem:[#allocation8 + $0x28] sm:$0xff] }
  0x2d   :  { %506 = vmatpush.bf16.msra.mxu2 %v959_v6 }
  0x2e   :  { %368 = vmatpush.bf16.msra.mxu1 %v948_v21 }
  0x30   :  { %229 = vmatpush.bf16.msra.mxu0 %v938_v7  ;;  %969 = vmatpush.bf16.msra.mxu3 %v938_v7 }
  0x32   :  { %369 = vmatpush.bf16.msra.mxu1 %v947_v22 }
  0x33   :  { %230 = vmatmul.bf16.vlgmr.msra.gmra.mxu0 %v930_v8  ;;  %260 = vmatmul.bf16.vlgmr.msra.gmra.mxu3 %v936_v9 }
  0x34   :  { %970 = vmatpush.bf16.msrb.mxu3 %v953_v14 }
  0x36   :  { %370 = vmatpush.bf16.msra.mxu1 %v946_v23 }
  0x38   :  { %971 = vmatpush.bf16.msrb.mxu3 %v952_v15 }
  0x3c   :  { %972 = vmatpush.bf16.msrb.mxu3 %v951_v16 }
  0x40   :  { %973 = vmatpush.bf16.msrb.mxu3 %v950_v17 }
  0x43   :  { %235 = vmatmul.bf16.gmra.mxu0 %v931_v10  ;;  %265 = vmatmul.bf16.gmra.mxu3 %v937_v11  ;;  %v958_v10 = vld [vmem:[#allocation8 + $0x20] sm:$0xff] }
  0x44   :  { %974 = vmatpush.bf16.msrb.mxu3 %v949_v20  ;;  %507 = vmatpush.bf16.msra.mxu2 %v958_v10 }
  0x48   :  { %975 = vmatpush.bf16.msrb.mxu3 %v948_v21  ;;  %v957_v21 = vld [vmem:[#allocation8 + $0x18] sm:$0xff] }
  0x49   :  { %508 = vmatpush.bf16.msra.mxu2 %v957_v21 }
  0x4c   :  { %976 = vmatpush.bf16.msrb.mxu3 %v947_v22  ;;  %v956_v22 = vld [vmem:[#allocation8 + $0x10] sm:$0xff] }
  0x4d   :  { %509 = vmatpush.bf16.msra.mxu2 %v956_v22 }
  0x50   :  { %977 = vmatpush.bf16.msrb.mxu3 %v946_v23  ;;  %v955_v23 = vld [vmem:[#allocation8 + $0x8] sm:$0xff] }
  0x51   :  { %510 = vmatpush.bf16.msra.mxu2 %v955_v23 }
  0x53   :  { %240 = vmatmul.bf16.gmra.mxu0 %v932_v12 }
  0x54   :  { %978 = vmatpush.bf16.msra.mxu3 %v961_v3 }
  0x58   :  { %979 = vmatpush.bf16.msra.mxu3 %v960_v5 }
  0x5c   :  { %980 = vmatpush.bf16.msra.mxu3 %v959_v6 }
  0x60   :  { %981 = vmatpush.bf16.msra.mxu3 %v958_v10 }
  0x63   :  { %245 = vmatmul.bf16.gmra.mxu0 %v933_v13 }
  0x64   :  { %982 = vmatpush.bf16.msra.mxu3 %v957_v21 }
  0x68   :  { %983 = vmatpush.bf16.msra.mxu3 %v956_v22 }
  0x6c   :  { %984 = vmatpush.bf16.msra.mxu3 %v955_v23 }
  0x73   :  { %250 = vmatmul.bf16.gmra.mxu0 %v934_v18 }
  0x83   :  { %255 = vmatmul.bf16.gmra.mxu0 %v935_v19 }
  0xb0   :  { %v231_v24 = vpop.f32.mrf.mxu0 }
  0xb1   :  { %v232_v27 = vadd.f32 %v1254_v25, %v231_v24  ;;  %v954_v24 = vld [vmem:[#allocation8] sm:$0xff] }
  0xb2   :  { %511 = vmatpush.bf16.msra.mxu2 %v954_v24  ;;  %985 = vmatpush.bf16.msra.mxu3 %v954_v24 }
  0xb3   :  { %v271_v30 = vmax.f32 %v232_v27, 0.0 }
  0xb6   :  { %v261_v26 = vpop.f32.mrf.mxu3 }
  0xb7   :  { %v262_v32 = vadd.f32 %v1254_v25, %v261_v26 }
  0xb8   :  { %v233_v28 = vpop.f32.mrf.mxu0 }
  0xb9   :  { %v234_v29 = vadd.f32 %v1254_v25, %v233_v28  ;;  %v283_v35 = vmax.f32 %v262_v32, 0.0 }
  0xbb   :  { %v272_v31 = vmax.f32 %v234_v29, 0.0 }
  0xbd   :  { %v287_v33 = vpack.c.bf16 %v272_v31, %v271_v30 }
  0xbe   :  { %v263_v34 = vpop.f32.mrf.mxu3 }
  0xbf   :  { %371 = vmatmul.bf16.vlgmr.msra.gmra.mxu1 %v287_v33  ;;  %v264_v36 = vadd.f32 %v1254_v25, %v263_v34 }
  0xc0   :  { %v236_v37 = vpop.f32.mrf.mxu0 }
  0xc1   :  { %v284_v38 = vmax.f32 %v264_v36, 0.0  ;;  %v237_v40 = vadd.f32 %v1254_v25, %v236_v37 }
  0xc3   :  { %v293_v39 = vpack.c.bf16 %v284_v38, %v283_v35  ;;  %v273_v44 = vmax.f32 %v237_v40, 0.0 }
  0xc5   :  { %401 = vmatmul.bf16.vlgmr.msrb.gmra.mxu3 %v293_v39 }
  0xc6   :  { %v266_v43 = vpop.f32.mrf.mxu3 }
  0xc7   :  { %v267_v47 = vadd.f32 %v1254_v25, %v266_v43 }
  0xc8   :  { %v238_v41 = vpop.f32.mrf.mxu0 }
  0xc9   :  { %v239_v42 = vadd.f32 %v1254_v25, %v238_v41  ;;  %v285_v50 = vmax.f32 %v267_v47, 0.0 }
  0xcb   :  { %v274_v45 = vmax.f32 %v239_v42, 0.0 }
  0xcd   :  { %v288_v46 = vpack.c.bf16 %v274_v45, %v273_v44 }
  0xce   :  { %v268_v49 = vpop.f32.mrf.mxu3 }
  0xcf   :  { %376 = vmatmul.bf16.gmra.mxu1 %v288_v46  ;;  %v269_v51 = vadd.f32 %v1254_v25, %v268_v49 }
  0xd0   :  { %v241_v48 = vpop.f32.mrf.mxu0 }
  0xd1   :  { %v286_v52 = vmax.f32 %v269_v51, 0.0  ;;  %v242_v53 = vadd.f32 %v1254_v25, %v241_v48 }
  0xd3   :  { %v294_v54 = vpack.c.bf16 %v286_v52, %v285_v50  ;;  %v275_v57 = vmax.f32 %v242_v53, 0.0 }
  0xd5   :  { %406 = vmatmul.bf16.gmra.mxu3 %v294_v54 }
  0xd8   :  { %v243_v55 = vpop.f32.mrf.mxu0 }
  0xd9   :  { %v244_v56 = vadd.f32 %v1254_v25, %v243_v55 }
  0xdb   :  { %v276_v58 = vmax.f32 %v244_v56, 0.0 }
  0xdd   :  { %v289_v59 = vpack.c.bf16 %v276_v58, %v275_v57 }
  0xdf   :  { %381 = vmatmul.bf16.gmra.mxu1 %v289_v59 }
  0xe0   :  { %v246_v60 = vpop.f32.mrf.mxu0 }
  0xe1   :  { %v247_v61 = vadd.f32 %v1254_v25, %v246_v60 }
  0xe3   :  { %v277_v0 = vmax.f32 %v247_v61, 0.0 }
  0xe8   :  { %v248_v62 = vpop.f32.mrf.mxu0 }
  0xe9   :  { %v249_v63 = vadd.f32 %v1254_v25, %v248_v62 }
  0xeb   :  { %v278_v1 = vmax.f32 %v249_v63, 0.0 }
  0xed   :  { %v290_v2 = vpack.c.bf16 %v278_v1, %v277_v0 }
  0xef   :  { %386 = vmatmul.bf16.gmra.mxu1 %v290_v2 }
  0xf0   :  { %v251_v4 = vpop.f32.mrf.mxu0 }
  0xf1   :  { %v252_v7 = vadd.f32 %v1254_v25, %v251_v4 }
  0xf3   :  { %v279_v11 = vmax.f32 %v252_v7, 0.0 }
  0xf8   :  { %v253_v8 = vpop.f32.mrf.mxu0 }
  0xf9   :  { %v254_v9 = vadd.f32 %v1254_v25, %v253_v8 }
  0xfb   :  { %v280_v12 = vmax.f32 %v254_v9, 0.0 }
  0xfd   :  { %v291_v13 = vpack.c.bf16 %v280_v12, %v279_v11 }
  0xff   :  { %391 = vmatmul.bf16.gmra.mxu1 %v291_v13 }
 0x100   :  { %v256_v14 = vpop.f32.mrf.mxu0 }
 0x101   :  { %v257_v15 = vadd.f32 %v1254_v25, %v256_v14 }
 0x103   :  { %v281_v18 = vmax.f32 %v257_v15, 0.0 }
 0x108   :  { %v258_v16 = vpop.f32.mrf.mxu0 }
 0x109   :  { %v259_v17 = vadd.f32 %v1254_v25, %v258_v16  ;;  %v996_v25 = vld [vmem:[%s1627_s4] ss:$0 sm:$0xff] }
 0x10b   :  { %v282_v19 = vmax.f32 %v259_v17, 0.0 }
 0x10d   :  { %v292_v20 = vpack.c.bf16 %v282_v19, %v281_v18  ;;  %v553_v18 = vlaneseq }
 0x10f   :  { %396 = vmatmul.bf16.gmra.mxu1 %v292_v20  ;;  %v1275_v19 = vand.u32 127, %v553_v18  ;;  %v1280_v20 = vld [vmem:[%s1629_s6] ss:$0 sm:$0xff]  ;;  %s1196_s6 = smov [#allocation10]  }
 0x110   :  { %s785_s23 = sshll.u32 %s1196_s6, 4  ;;  %s786_s23 = int_to_ptr.vmem [resolvable:$true] %s785_s23 }
 0x111   :  { %vm555_vm0 = vcmp.lt.s32.totalorder %v1275_v19, 6  ;;  %vm732_vm1 = vcmp.eq.s32.totalorder %v1275_v19, 6 }
 0x13c   :  { %v372_v26 = vpop.f32.mrf.mxu1 }
 0x13d   :  { %v373_v27 = vadd.f32 %v996_v25, %v372_v26 }
 0x13f   :  { %v412_v30 = vmax.f32 %v373_v27, 0.0 }
 0x144   :  { %v374_v28 = vpop.f32.mrf.mxu1 }
 0x145   :  { %v375_v29 = vadd.f32 %v996_v25, %v374_v28 }
 0x147   :  { %v413_v31 = vmax.f32 %v375_v29, 0.0 }
 0x148   :  { %v402_v32 = vpop.f32.mrf.mxu3 }
 0x149   :  { %v428_v33 = vpack.c.bf16 %v413_v31, %v412_v30  ;;  %v403_v35 = vadd.f32 %v996_v25, %v402_v32 }
 0x14b   :  { %512 = vmatmul.bf16.vlgmr.msra.gmra.mxu2 %v428_v33  ;;  %v424_v37 = vmax.f32 %v403_v35, 0.0 }
 0x14c   :  { %v377_v34 = vpop.f32.mrf.mxu1 }
 0x14d   :  { %v378_v39 = vadd.f32 %v996_v25, %v377_v34 }
 0x14f   :  { %v414_v44 = vmax.f32 %v378_v39, 0.0 }
 0x150   :  { %v404_v36 = vpop.f32.mrf.mxu3 }
 0x151   :  { %v405_v38 = vadd.f32 %v996_v25, %v404_v36 }
 0x153   :  { %v425_v40 = vmax.f32 %v405_v38, 0.0 }
 0x154   :  { %v379_v41 = vpop.f32.mrf.mxu1 }
 0x155   :  { %v380_v42 = vadd.f32 %v996_v25, %v379_v41  ;;  %v434_v43 = vpack.c.bf16 %v425_v40, %v424_v37 }
 0x157   :  { %v415_v45 = vmax.f32 %v380_v42, 0.0  ;;  %542 = vmatmul.bf16.vlgmr.msra.gmra.mxu3 %v434_v43 }
 0x158   :  { %v407_v48 = vpop.f32.mrf.mxu3 }
 0x159   :  { %v429_v46 = vpack.c.bf16 %v415_v45, %v414_v44  ;;  %v408_v49 = vadd.f32 %v996_v25, %v407_v48 }
 0x15b   :  { %517 = vmatmul.bf16.gmra.mxu2 %v429_v46  ;;  %v426_v54 = vmax.f32 %v408_v49, 0.0 }
 0x15c   :  { %v382_v47 = vpop.f32.mrf.mxu1 }
 0x15d   :  { %v383_v50 = vadd.f32 %v996_v25, %v382_v47 }
 0x15f   :  { %v416_v56 = vmax.f32 %v383_v50, 0.0 }
 0x160   :  { %v409_v52 = vpop.f32.mrf.mxu3 }
 0x161   :  { %v410_v55 = vadd.f32 %v996_v25, %v409_v52 }
 0x163   :  { %v427_v58 = vmax.f32 %v410_v55, 0.0 }
 0x164   :  { %v384_v51 = vpop.f32.mrf.mxu1 }
 0x165   :  { %v385_v53 = vadd.f32 %v996_v25, %v384_v51  ;;  %v435_v60 = vpack.c.bf16 %v427_v58, %v426_v54 }
 0x167   :  { %v417_v57 = vmax.f32 %v385_v53, 0.0  ;;  %547 = vmatmul.bf16.gmra.mxu3 %v435_v60 }
 0x169   :  { %v430_v59 = vpack.c.bf16 %v417_v57, %v416_v56 }
 0x16b   :  { %522 = vmatmul.bf16.gmra.mxu2 %v430_v59 }
 0x16c   :  { %v387_v61 = vpop.f32.mrf.mxu1 }
 0x16d   :  { %v388_v62 = vadd.f32 %v996_v25, %v387_v61 }
 0x16f   :  { %v418_v1 = vmax.f32 %v388_v62, 0.0 }
 0x174   :  { %v389_v63 = vpop.f32.mrf.mxu1 }
 0x175   :  { %v390_v0 = vadd.f32 %v996_v25, %v389_v63 }
 0x177   :  { %v419_v2 = vmax.f32 %v390_v0, 0.0 }
 0x179   :  { %v431_v3 = vpack.c.bf16 %v419_v2, %v418_v1 }
 0x17b   :  { %527 = vmatmul.bf16.gmra.mxu2 %v431_v3 }
 0x17c   :  { %v392_v4 = vpop.f32.mrf.mxu1 }
 0x17d   :  { %v393_v5 = vadd.f32 %v996_v25, %v392_v4 }
 0x17f   :  { %v420_v8 = vmax.f32 %v393_v5, 0.0 }
 0x184   :  { %v394_v6 = vpop.f32.mrf.mxu1 }
 0x185   :  { %v395_v7 = vadd.f32 %v996_v25, %v394_v6 }
 0x187   :  { %v421_v9 = vmax.f32 %v395_v7, 0.0 }
 0x189   :  { %v432_v10 = vpack.c.bf16 %v421_v9, %v420_v8 }
 0x18b   :  { %532 = vmatmul.bf16.gmra.mxu2 %v432_v10 }
 0x18c   :  { %v397_v11 = vpop.f32.mrf.mxu1 }
 0x18d   :  { %v398_v12 = vadd.f32 %v996_v25, %v397_v11 }
 0x18f   :  { %v422_v15 = vmax.f32 %v398_v12, 0.0 }
 0x194   :  { %v399_v13 = vpop.f32.mrf.mxu1 }
 0x195   :  { %v400_v14 = vadd.f32 %v996_v25, %v399_v13 }
 0x197   :  { %v423_v16 = vmax.f32 %v400_v14, 0.0 }
 0x199   :  { %v433_v17 = vpack.c.bf16 %v423_v16, %v422_v15 }
 0x19b   :  { %537 = vmatmul.bf16.gmra.mxu2 %v433_v17 }
 0x1ce   :  { %v513_v21 = vpop.f32.mrf.mxu2 }
 0x1cf   :  { %v1284_v22 = vadd.f32 %v1280_v20, %v513_v21 }
 0x1d1   :  { %v1289_v23 = vsel %vm555_vm0, %v1284_v22, -inf }
 0x1d2   :  { %572 = vmax.xlane.f32.xlu0 %v1289_v23 }
 0x1d6   :  { %v515_v24 = vpop.f32.mrf.mxu2 }
 0x1d7   :  { %v1293_v26 = vadd.f32 %v1280_v20, %v515_v24 }
 0x1d9   :  { %v1298_v25 = vsel %vm555_vm0, %v1293_v26, -inf }
 0x1da   :  { %574 = vmax.xlane.f32.xlu0 %v1298_v25  ;;  %v543_v27 = vpop.f32.mrf.mxu3 }
 0x1db   :  { %v1302_v28 = vadd.f32 %v1280_v20, %v543_v27 }
 0x1dd   :  { %v1310_v31 = vsel %vm555_vm0, %v1302_v28, -inf }
 0x1de   :  { %v518_v29 = vpop.f32.mrf.mxu2 }
 0x1df   :  { %v1305_v30 = vadd.f32 %v1280_v20, %v518_v29 }
 0x1e1   :  { %v1315_v32 = vsel %vm555_vm0, %v1305_v30, -inf }
 0x1e2   :  { %576 = vmax.xlane.f32.xlu1 %v1315_v32  ;;  %596 = vmax.xlane.f32.xlu0 %v1310_v31  ;;  %v545_v47 = vpop.f32.mrf.mxu3 }
 0x1e3   :  { %v1401_v62 = vadd.f32 %v1280_v20, %v545_v47 }
 0x1e5   :  { %v1414_v2 = vsel %vm555_vm0, %v1401_v62, -inf }
 0x1e6   :  { %v520_v33 = vpop.f32.mrf.mxu2 }
 0x1e7   :  { %v1320_v34 = vadd.f32 %v1280_v20, %v520_v33 }
 0x1e9   :  { %v1325_v35 = vsel %vm555_vm0, %v1320_v34, -inf }
 0x1ea   :  { %578 = vmax.xlane.f32.xlu1 %v1325_v35  ;;  %v548_v51 = vpop.f32.mrf.mxu3 }
 0x1eb   :  { %v1419_v3 = vadd.f32 %v1280_v20, %v548_v51 }
 0x1ed   :  { %v1424_v4 = vsel %vm555_vm0, %v1419_v3, -inf }
 0x1ee   :  { %v523_v36 = vpop.f32.mrf.mxu2 }
 0x1ef   :  { %v1329_v37 = vadd.f32 %v1280_v20, %v523_v36 }
 0x1f1   :  { %v1334_v38 = vsel %vm555_vm0, %v1329_v37, -inf }
 0x1f2   :  { %580 = vmax.xlane.f32.xlu2 %v1334_v38  ;;  %v550_v56 = vpop.f32.mrf.mxu3 }
 0x1f3   :  { %v1383_v57 = vadd.f32 %v1280_v20, %v550_v56 }
 0x1f5   :  { %v1396_v61 = vsel %vm555_vm0, %v1383_v57, -inf }
 0x1f6   :  { %v525_v39 = vpop.f32.mrf.mxu2 }
 0x1f7   :  { %v1338_v40 = vadd.f32 %v1280_v20, %v525_v39 }
 0x1f9   :  { %v1343_v41 = vsel %vm555_vm0, %v1338_v40, -inf }
 0x1fa   :  { %582 = vmax.xlane.f32.xlu2 %v1343_v41 }
 0x1fe   :  { %v528_v42 = vpop.f32.mrf.mxu2 }
 0x1ff   :  { %v1347_v43 = vadd.f32 %v1280_v20, %v528_v42 }
 0x201   :  { %v1352_v44 = vsel %vm555_vm0, %v1347_v43, -inf }
 0x202   :  { %584 = vmax.xlane.f32.xlu0 %v1352_v44 }
 0x206   :  { %v530_v45 = vpop.f32.mrf.mxu2 }
 0x207   :  { %v1356_v46 = vadd.f32 %v1280_v20, %v530_v45 }
 0x209   :  { %v1361_v48 = vsel %vm555_vm0, %v1356_v46, -inf }
 0x20a   :  { %586 = vmax.xlane.f32.xlu1 %v1361_v48 }
 0x20e   :  { %v533_v49 = vpop.f32.mrf.mxu2 }
 0x20f   :  { %v1365_v50 = vadd.f32 %v1280_v20, %v533_v49 }
 0x211   :  { %v1370_v52 = vsel %vm555_vm0, %v1365_v50, -inf }
 0x212   :  { %588 = vmax.xlane.f32.xlu2 %v1370_v52 }
 0x216   :  { %v535_v53 = vpop.f32.mrf.mxu2 }
 0x217   :  { %v1374_v54 = vadd.f32 %v1280_v20, %v535_v53 }
 0x219   :  { %v1379_v55 = vsel %vm555_vm0, %v1374_v54, -inf }
 0x21a   :  { %590 = vmax.xlane.f32.xlu0 %v1379_v55 }
 0x21e   :  { %v538_v58 = vpop.f32.mrf.mxu2 }
 0x21f   :  { %v1386_v59 = vadd.f32 %v1280_v20, %v538_v58 }
 0x221   :  { %v1391_v60 = vsel %vm555_vm0, %v1386_v59, -inf }
 0x222   :  { %592 = vmax.xlane.f32.xlu1 %v1391_v60  ;;  %602 = vmax.xlane.f32.xlu0 %v1396_v61 }
 0x226   :  { %v540_v63 = vpop.f32.mrf.mxu2 }
 0x227   :  { %v1404_v0 = vadd.f32 %v1280_v20, %v540_v63 }
 0x229   :  { %v1409_v1 = vsel %vm555_vm0, %v1404_v0, -inf }
 0x22a   :  { %594 = vmax.xlane.f32.xlu2 %v1409_v1  ;;  %598 = vmax.xlane.f32.xlu1 %v1414_v2 }
 0x232   :  { %600 = vmax.xlane.f32.xlu2 %v1424_v4 }
 0x245   :  { %v573_v5 = vpop.xlane.xlu0 %572 }
 0x246   :  { %v604_v6 = vsub.f32 %v1289_v23, %v573_v5 }
 0x248   :  { %v620_v7 = vmul.f32 1.442695, %v604_v6 }
 0x24a   :  { %998 = vpow2.f32 %v620_v7 }
 0x24d   :  { %v575_v8 = vpop.xlane.xlu0 %574 }
 0x24e   :  { %v605_v9 = vsub.f32 %v1298_v25, %v575_v8 }
 0x250   :  { %v999_v10 = vpop.eup %998  ;;  %v622_v11 = vmul.f32 1.442695, %v605_v9 }
 0x251   :  { %v1431_v12 = vsel %vm555_vm0, %v999_v10, 0.0 }
 0x252   :  { %1000 = vpow2.f32 %v622_v11  ;;  %668 = vadd.xlane.f32.xlu1 %v1431_v12 }
 0x255   :  { %v577_v13 = vpop.xlane.xlu1 %576  ;;  %v597_v14 = vpop.xlane.xlu0 %596 }
 0x256   :  { %v606_v15 = vsub.f32 %v1315_v32, %v577_v13  ;;  %v616_v16 = vsub.f32 %v1310_v31, %v597_v14 }
 0x258   :  { %v1001_v17 = vpop.eup %1000  ;;  %v624_v18 = vmul.f32 1.442695, %v606_v15  ;;  %v644_v20 = vmul.f32 1.442695, %v616_v16 }
 0x259   :  { %v1438_v21 = vsel %vm555_vm0, %v1001_v17, 0.0 }
 0x25a   :  { %1002 = vpow2.f32 %v624_v18  ;;  %670 = vadd.xlane.f32.xlu2 %v1438_v21 }
 0x25b   :  { %1004 = vpow2.f32 %v644_v20 }
 0x25d   :  { %v579_v23 = vpop.xlane.xlu1 %578 }
 0x25e   :  { %v607_v24 = vsub.f32 %v1325_v35, %v579_v23 }
 0x260   :  { %v1003_v25 = vpop.eup %1002  ;;  %v626_v27 = vmul.f32 1.442695, %v607_v24 }
 0x261   :  { %v1005_v29 = vpop.eup %1004  ;;  %v1444_v31 = vsel %vm555_vm0, %v1003_v25, 0.0 }
 0x262   :  { %1006 = vpow2.f32 %v626_v27  ;;  %672 = vadd.xlane.f32.xlu0 %v1444_v31  ;;  %v1449_v32 = vsel %vm555_vm0, %v1005_v29, 0.0 }
 0x263   :  { %692 = vadd.xlane.f32.xlu1 %v1449_v32 }
 0x265   :  { %v581_v33 = vpop.xlane.xlu2 %580 }
 0x266   :  { %v608_v36 = vsub.f32 %v1334_v38, %v581_v33 }
 0x268   :  { %v1007_v35 = vpop.eup %1006  ;;  %v628_v39 = vmul.f32 1.442695, %v608_v36 }
 0x269   :  { %v1455_v42 = vsel %vm555_vm0, %v1007_v35, 0.0 }
 0x26a   :  { %1008 = vpow2.f32 %v628_v39 }
 0x26b   :  { %674 = vadd.xlane.f32.xlu1 %v1455_v42 }
 0x26d   :  { %v583_v45 = vpop.xlane.xlu2 %582 }
 0x26e   :  { %v609_v47 = vsub.f32 %v1343_v41, %v583_v45 }
 0x270   :  { %v1009_v49 = vpop.eup %1008  ;;  %v630_v51 = vmul.f32 1.442695, %v609_v47 }
 0x271   :  { %v1461_v53 = vsel %vm555_vm0, %v1009_v49, 0.0 }
 0x272   :  { %1010 = vpow2.f32 %v630_v51  ;;  %676 = vadd.xlane.f32.xlu2 %v1461_v53 }
 0x275   :  { %v585_v38 = vpop.xlane.xlu0 %584 }
 0x276   :  { %v610_v56 = vsub.f32 %v1352_v44, %v585_v38 }
 0x278   :  { %v1011_v58 = vpop.eup %1010  ;;  %v632_v63 = vmul.f32 1.442695, %v610_v56 }
 0x279   :  { %v1467_v5 = vsel %vm555_vm0, %v1011_v58, 0.0 }
 0x27a   :  { %1012 = vpow2.f32 %v632_v63  ;;  %678 = vadd.xlane.f32.xlu0 %v1467_v5 }
 0x27d   :  { %v587_v41 = vpop.xlane.xlu1 %586 }
 0x27e   :  { %v611_v6 = vsub.f32 %v1361_v48, %v587_v41 }
 0x280   :  { %v1013_v7 = vpop.eup %1012  ;;  %v634_v8 = vmul.f32 1.442695, %v611_v6 }
 0x281   :  { %v1473_v9 = vsel %vm555_vm0, %v1013_v7, 0.0 }
 0x282   :  { %1014 = vpow2.f32 %v634_v8  ;;  %680 = vadd.xlane.f32.xlu1 %v1473_v9 }
 0x285   :  { %v589_v44 = vpop.xlane.xlu2 %588 }
 0x286   :  { %v612_v10 = vsub.f32 %v1370_v52, %v589_v44 }
 0x288   :  { %v1015_v11 = vpop.eup %1014  ;;  %v636_v13 = vmul.f32 1.442695, %v612_v10 }
 0x289   :  { %v1479_v14 = vsel %vm555_vm0, %v1015_v11, 0.0  ;;  %v733_v11 = vsel %vm732_vm1, %v1284_v22, 0.0 }
 0x28a   :  { %1016 = vpow2.f32 %v636_v13  ;;  %682 = vadd.xlane.f32.xlu2 %v1479_v14 }
 0x28d   :  { %v591_v48 = vpop.xlane.xlu0 %590 }
 0x28e   :  { %v613_v15 = vsub.f32 %v1379_v55, %v591_v48 }
 0x290   :  { %v1017_v16 = vpop.eup %1016  ;;  %v638_v17 = vmul.f32 1.442695, %v613_v15 }
 0x291   :  { %v1485_v18 = vsel %vm555_vm0, %v1017_v16, 0.0 }
 0x292   :  { %1018 = vpow2.f32 %v638_v17  ;;  %684 = vadd.xlane.f32.xlu0 %v1485_v18  ;;  %v734_v17 = vsel %vm732_vm1, %v1293_v26, 0.0  ;;  %v745_v26 = vsel %vm732_vm1, %v1302_v28, 0.0 }
 0x295   :  { %v593_v52 = vpop.xlane.xlu1 %592  ;;  %v603_v20 = vpop.xlane.xlu0 %602 }
 0x296   :  { %v614_v23 = vsub.f32 %v1391_v60, %v593_v52  ;;  %v619_v24 = vsub.f32 %v1396_v61, %v603_v20 }
 0x298   :  { %v1019_v25 = vpop.eup %1018  ;;  %v640_v27 = vmul.f32 1.442695, %v614_v23  ;;  %v650_v29 = vmul.f32 1.442695, %v619_v24 }
 0x299   :  { %v1492_v55 = vsel %vm555_vm0, %v1019_v25, 0.0 }
 0x29a   :  { %1020 = vpow2.f32 %v640_v27  ;;  %686 = vadd.xlane.f32.xlu1 %v1492_v55 }
 0x29b   :  { %1022 = vpow2.f32 %v650_v29 }
 0x29d   :  { %v595_v33 = vpop.xlane.xlu2 %594  ;;  %v599_v36 = vpop.xlane.xlu1 %598 }
 0x29e   :  { %v615_v35 = vsub.f32 %v1409_v1, %v595_v33  ;;  %v617_v39 = vsub.f32 %v1414_v2, %v599_v36 }
 0x2a0   :  { %v1021_v60 = vpop.eup %1020  ;;  %v642_v45 = vmul.f32 1.442695, %v615_v35  ;;  %v646_v61 = vmul.f32 1.442695, %v617_v39 }
 0x2a1   :  { %v1023_v47 = vpop.eup %1022  ;;  %v1499_v49 = vsel %vm555_vm0, %v1021_v60, 0.0  ;;  %v737_v60 = vsel %vm732_vm1, %v1329_v37, 0.0 }
 0x2a2   :  { %1024 = vpow2.f32 %v642_v45  ;;  %688 = vadd.xlane.f32.xlu2 %v1499_v49  ;;  %v1504_v51 = vsel %vm555_vm0, %v1023_v47, 0.0  ;;  %v738_v47 = vsel %vm732_vm1, %v1338_v40, 0.0 }
 0x2a3   :  { %1026 = vpow2.f32 %v646_v61  ;;  %698 = vadd.xlane.f32.xlu1 %v1504_v51 }
 0x2a5   :  { %v601_v1 = vpop.xlane.xlu2 %600 }
 0x2a6   :  { %v618_v2 = vsub.f32 %v1424_v4, %v601_v1 }
 0x2a8   :  { %v1025_v38 = vpop.eup %1024  ;;  %v648_v56 = vmul.f32 1.442695, %v618_v2 }
 0x2a9   :  { %v1027_v58 = vpop.eup %1026  ;;  %v1510_v63 = vsel %vm555_vm0, %v1025_v38, 0.0  ;;  %v739_v38 = vsel %vm732_vm1, %v1347_v43, 0.0 }
 0x2aa   :  { %1028 = vpow2.f32 %v648_v56  ;;  %690 = vadd.xlane.f32.xlu0 %v1510_v63  ;;  %v1515_v41 = vsel %vm555_vm0, %v1027_v58, 0.0 }
 0x2ab   :  { %694 = vadd.xlane.f32.xlu2 %v1515_v41 }
 0x2b0   :  { %v1029_v6 = vpop.eup %1028 }
 0x2b1   :  { %v1520_v4 = vsel %vm555_vm0, %v1029_v6, 0.0  ;;  %v740_v6 = vsel %vm732_vm1, %v1356_v46, 0.0 }
 0x2b2   :  { %696 = vadd.xlane.f32.xlu0 %v1520_v4 }
 0x2c5   :  { %v669_v7 = vpop.xlane.xlu1 %668 }
 0x2c6   :  { %1030 = vrcp.f32 %v669_v7 }
 0x2cc   :  { %v1031_v8 = vpop.eup %1030 }
 0x2cd   :  { %v716_v44 = vmul.f32 %v1031_v8, %v1431_v12  ;;  %v671_v10 = vpop.xlane.xlu2 %670 }
 0x2ce   :  { %1032 = vrcp.f32 %v671_v10 }
 0x2cf   :  { %v749_v13 = vsel %vm555_vm0, %v716_v44, %v733_v11  ;;  %v741_v44 = vsel %vm732_vm1, %v1365_v50, 0.0 }
 0x2d0   :  { %765 = vst [vmem:[#allocation10] sm:$0xff] %v749_v13  ;;  %v742_v13 = vsel %vm732_vm1, %v1374_v54, 0.0  ;;  %v748_v54 = vsel %vm732_vm1, %v1383_v57, 0.0 }
 0x2d4   :  { %v1033_v48 = vpop.eup %1032 }
 0x2d5   :  { %v717_v15 = vmul.f32 %v1033_v48, %v1438_v21  ;;  %v673_v16 = vpop.xlane.xlu0 %672  ;;  %v735_v21 = vsel %vm732_vm1, %v1305_v30, 0.0 }
 0x2d6   :  { %v693_v52 = vpop.xlane.xlu1 %692  ;;  %1034 = vrcp.f32 %v673_v16 }
 0x2d7   :  { %v750_v12 = vsel %vm555_vm0, %v717_v15, %v734_v17  ;;  %1036 = vrcp.f32 %v693_v52 }
 0x2d8   :  { %766 = vst [vmem:[#allocation10 + $0x8] sm:$0xff] %v750_v12 }
 0x2dc   :  { %v1035_v22 = vpop.eup %1034 }
 0x2dd   :  { %v1037_v20 = vpop.eup %1036  ;;  %v718_v23 = vmul.f32 %v1035_v22, %v1444_v31 }
 0x2de   :  { %v728_v24 = vmul.f32 %v1037_v20, %v1449_v32  ;;  %v675_v25 = vpop.xlane.xlu1 %674  ;;  %v736_v32 = vsel %vm732_vm1, %v1320_v34, 0.0 }
 0x2df   :  { %v751_v27 = vsel %vm555_vm0, %v718_v23, %v735_v21  ;;  %1038 = vrcp.f32 %v675_v25  ;;  %v744_v21 = vsel %vm732_vm1, %v1404_v0, 0.0 }
 0x2e0   :  { %v761_v29 = vsel %vm555_vm0, %v728_v24, %v745_v26  ;;  %767 = vst [vmem:[#allocation10 + $0x10] sm:$0xff] %v751_v27  ;;  %v746_v24 = vsel %vm732_vm1, %v1401_v62, 0.0  ;;  %v747_v62 = vsel %vm732_vm1, %v1419_v3, 0.0 }
 0x2e1   :  { %777 = vst [vmem:[#allocation10 + $0x60] sm:$0xff] %v761_v29 }
 0x2e5   :  { %v1039_v31 = vpop.eup %1038  ;;  %v677_v33 = vpop.xlane.xlu2 %676 }
 0x2e6   :  { %v719_v30 = vmul.f32 %v1039_v31, %v1455_v42  ;;  %1040 = vrcp.f32 %v677_v33 }
 0x2e8   :  { %v752_v28 = vsel %vm555_vm0, %v719_v30, %v736_v32 }
 0x2e9   :  { %768 = vst [vmem:[#allocation10 + $0x18] sm:$0xff] %v752_v28 }
 0x2ec   :  { %v1041_v36 = vpop.eup %1040 }
 0x2ed   :  { %v720_v35 = vmul.f32 %v1041_v36, %v1461_v53  ;;  %v679_v39 = vpop.xlane.xlu0 %678 }
 0x2ee   :  { %1042 = vrcp.f32 %v679_v39 }
 0x2ef   :  { %v753_v42 = vsel %vm555_vm0, %v720_v35, %v737_v60 }
 0x2f0   :  { %769 = vst [vmem:[#allocation10 + $0x20] sm:$0xff] %v753_v42 }
 0x2f4   :  { %v1043_v45 = vpop.eup %1042 }
 0x2f5   :  { %v721_v34 = vmul.f32 %v1043_v45, %v1467_v5  ;;  %v681_v61 = vpop.xlane.xlu1 %680 }
 0x2f6   :  { %1044 = vrcp.f32 %v681_v61 }
 0x2f7   :  { %v754_v53 = vsel %vm555_vm0, %v721_v34, %v738_v47 }
 0x2f8   :  { %770 = vst [vmem:[#allocation10 + $0x28] sm:$0xff] %v754_v53 }
 0x2fc   :  { %v1045_v1 = vpop.eup %1044 }
 0x2fd   :  { %v722_v37 = vmul.f32 %v1045_v1, %v1473_v9  ;;  %v683_v2 = vpop.xlane.xlu2 %682 }
 0x2fe   :  { %1046 = vrcp.f32 %v683_v2 }
 0x2ff   :  { %v755_v5 = vsel %vm555_vm0, %v722_v37, %v739_v38 }
 0x300   :  { %771 = vst [vmem:[#allocation10 + $0x30] sm:$0xff] %v755_v5 }
 0x304   :  { %v1047_v56 = vpop.eup %1046 }
 0x305   :  { %v723_v40 = vmul.f32 %v1047_v56, %v1479_v14  ;;  %v685_v58 = vpop.xlane.xlu0 %684 }
 0x306   :  { %1048 = vrcp.f32 %v685_v58 }
 0x307   :  { %v756_v9 = vsel %vm555_vm0, %v723_v40, %v740_v6 }
 0x308   :  { %772 = vst [vmem:[#allocation10 + $0x38] sm:$0xff] %v756_v9 }
 0x30c   :  { %v1049_v7 = vpop.eup %1048 }
 0x30d   :  { %v724_v43 = vmul.f32 %v1049_v7, %v1485_v18  ;;  %v687_v8 = vpop.xlane.xlu1 %686 }
 0x30e   :  { %1050 = vrcp.f32 %v687_v8 }
 0x30f   :  { %v757_v14 = vsel %vm555_vm0, %v724_v43, %v741_v44 }
 0x310   :  { %773 = vst [vmem:[#allocation10 + $0x40] sm:$0xff] %v757_v14 }
 0x314   :  { %v1051_v10 = vpop.eup %1050 }
 0x315   :  { %v725_v46 = vmul.f32 %v1051_v10, %v1492_v55  ;;  %v689_v11 = vpop.xlane.xlu2 %688  ;;  %v743_v55 = vsel %vm732_vm1, %v1386_v59, 0.0 }
 0x316   :  { %1052 = vrcp.f32 %v689_v11  ;;  %v699_v18 = vpop.xlane.xlu1 %698 }
 0x317   :  { %v758_v48 = vsel %vm555_vm0, %v725_v46, %v742_v13  ;;  %1054 = vrcp.f32 %v699_v18 }
 0x318   :  { %774 = vst [vmem:[#allocation10 + $0x48] sm:$0xff] %v758_v48 }
 0x31c   :  { %v1053_v50 = vpop.eup %1052 }
 0x31d   :  { %v1055_v15 = vpop.eup %1054  ;;  %v726_v16 = vmul.f32 %v1053_v50, %v1499_v49  ;;  %v691_v17 = vpop.xlane.xlu0 %690 }
 0x31e   :  { %v731_v52 = vmul.f32 %v1055_v15, %v1504_v51  ;;  %v695_v12 = vpop.xlane.xlu2 %694  ;;  %1056 = vrcp.f32 %v691_v17 }
 0x31f   :  { %v759_v22 = vsel %vm555_vm0, %v726_v16, %v743_v55  ;;  %1058 = vrcp.f32 %v695_v12 }
 0x320   :  { %775 = vst [vmem:[#allocation10 + $0x50] sm:$0xff] %v759_v22  ;;  %v764_v49 = vsel %vm555_vm0, %v731_v52, %v748_v54 }
 0x321   :  { %780 = vst [vmem:[#allocation10 + $0x78] sm:$0xff] %v764_v49 }
 0x324   :  { %v1057_v20 = vpop.eup %1056 }
 0x325   :  { %v1059_v23 = vpop.eup %1058  ;;  %v727_v59 = vmul.f32 %v1057_v20, %v1510_v63  ;;  %v697_v51 = vpop.xlane.xlu0 %696 }
 0x326   :  { %v729_v57 = vmul.f32 %v1059_v23, %v1515_v41  ;;  %1060 = vrcp.f32 %v697_v51 }
 0x327   :  { %v760_v25 = vsel %vm555_vm0, %v727_v59, %v744_v21 }
 0x328   :  { %v762_v26 = vsel %vm555_vm0, %v729_v57, %v746_v24  ;;  %776 = vst [vmem:[#allocation10 + $0x58] sm:$0xff] %v760_v25 }
 0x329   :  { %778 = vst [vmem:[#allocation10 + $0x68] sm:$0xff] %v762_v26 }
 0x32c   :  { %v1061_v0 = vpop.eup %1060 }
 0x32d   :  { %v730_v63 = vmul.f32 %v1061_v0, %v1520_v4 }
 0x32f   :  { %v763_v41 = vsel %vm555_vm0, %v730_v63, %v747_v62 }
 0x330   :  { %779 = vst [vmem:[#allocation10 + $0x70] sm:$0xff] %v763_v41 }
 0x331   :  { %793 = dma.vmem_to_hbm [thread:$0]  %s786_s23, 2048, %s788_s26, [#allocation4], %s1197_s27, %s1197_s27, %s1198_s28  }
 0x332   :  { %1188 = dma.done.wait [#allocation4], 2048  }
 0x333   :  { %1189 = vsyncadd [#allocation4], 4294965248 }
 0x334   :  { %798 = vsyncpa [#allocation3], 1 }
 0x335   :  { %799 = vsyncpa [#allocation6], 1 }
 0x336   :  { %800 = vsyncpa [#allocation9], 1 }
 0x337   :  { %801 = vsyncpa [#allocation4], 1 }

</bundles_post_ra>
